<compile_context>
chip_gen: v7x
topology: tpu7x:2x2x1
jax: 0.10.0
libtpu: 0.0.40
codegen_flags: <defaults>
</compile_context>

<pallas_src>
import functools

import jax
import jax.numpy as jnp
import numpy as np
from jax.experimental import pallas as pl
from jax.experimental.pallas import tpu as pltpu

LEAKY_SLOPE = 0.01  # torch.nn.LeakyReLU default negative_slope


# ----------------------------- Pallas kernel ---------------------------------
def _fused_up_kernel(x1_ref, x2f_ref, g1t_ref, mask_ref,
                     w1_ref, b1_ref, w2_ref, b2_ref, o_ref,
                     *, Wp, Pp, HW1, ips):
    """Fused upsample + pad + concat + (conv3x3+bias+LeakyReLU) x 2 for `ips` images.

    Layout: "flat padded frame" = per image a row-major (Hp, Wp) spatial grid on the
    lane axis, lane-padded to Pp (multiple of 128); `ips` image frames side by side on
    lanes; channels on sublanes.

    x1_ref  : (1, C1, ips*H1*W1) bf16   low-res input, flattened spatial
    x2f_ref : (1, C2, ips*Pp)    bf16   skip connection, already in padded-frame layout
    g1t_ref : (H1*W1, Pp)        bf16   upsample(x2, align_corners) + centre-pad + halo
    mask_ref: (1, ips*Pp)        f32    1.0 on valid conv-output anchors, 0.0 elsewhere
    w1_ref  : (Cout, 9*Cin)      bf16   conv1 weights, columns ordered (dy, dx, cin)
    b1_ref  : (Cout, 1)          f32
    w2_ref  : (Cout, 9*Cout)     bf16   conv2 weights
    b2_ref  : (Cout, 1)          f32
    o_ref   : (1, Cout, ips*Pp)         output in frame layout (wrapper strips halo)
    """
    f32 = jnp.float32
    bf16 = jnp.bfloat16

    # x1 path: bilinear x2 upsample (align_corners) + F.pad + 1px conv halo folded into
    # one constant stencil matmul per image (gather-free, real interpolation work).
    x1_blk = x1_ref[0]                                                  # (C1, ips*HW1)
    fr1_parts = []
    for i in range(ips):
        xi = x1_blk[:, i * HW1:(i + 1) * HW1]                           # (C1, HW1)
        fr1_parts.append(jnp.dot(xi, g1t_ref[...],
                                 preferred_element_type=f32))           # (C1, Pp) f32
    fr1 = fr1_parts[0] if ips == 1 else jnp.concatenate(fr1_parts, axis=1)

    # Channel concat torch.cat([x2, up(x1)], dim=1): x2 arrives pre-padded (halo zeros)
    # straight from HBM -- no placement matmul / copy inside the kernel.
    frame = jnp.concatenate([x2f_ref[0], fr1.astype(bf16)], axis=0)     # (Cin, L) bf16

    def conv3x3_leaky(fr, w_ref, b_ref):
        # 3x3 conv as ONE big-K MXU matmul via roll-based im2col: tap (dy, dx) is a
        # lane shift of the flat frame.  Valid output anchors only read lanes
        # anchor .. anchor + 2*Wp + 2 <= P-1 inside their own image frame, so rolls can
        # never contaminate them (padded / wrapped lanes only feed discarded anchors).
        taps = [fr if (dy == 0 and dx == 0)
                else jnp.roll(fr, -(dy * Wp + dx), axis=1)
                for dy in range(3) for dx in range(3)]
        patches = jnp.concatenate(taps, axis=0)                         # (9*cin, L) bf16
        acc = b_ref[...] + jnp.dot(w_ref[...], patches,
                                   preferred_element_type=f32)          # (Cout, L) f32
        return jnp.where(acc >= 0, acc, LEAKY_SLOPE * acc)              # fused LeakyReLU

    y1 = conv3x3_leaky(frame, w1_ref, b1_ref)
    # Re-pad for conv2 entirely in VMEM: zero out-of-image anchors, shift the valid
    # block to offset (1, 1) of each image's padded frame (wrapped-in lanes are zeros).
    y1_frame = jnp.roll(y1 * mask_ref[...], Wp + 1, axis=1).astype(bf16)
    y2 = conv3x3_leaky(y1_frame, w2_ref, b2_ref)

    # Single unmasked full-lane store in frame layout; no extraction matmul.
    o_ref[0] = y2.astype(o_ref.dtype)


# ------------------------- constant stencil matrices --------------------------
def _axis_upsample_matrix(n_in):
    """(2*n_in, n_in) bilinear x2 upsample matrix, align_corners=True (PyTorch)."""
    n_out = 2 * n_in
    m = np.zeros((n_out, n_in), np.float32)
    scale = (n_in - 1) / (n_out - 1) if n_out > 1 else 0.0
    for o in range(n_out):
        pos = o * scale
        i0 = min(int(np.floor(pos)), n_in - 1)
        i1 = min(i0 + 1, n_in - 1)
        f = pos - i0
        m[o, i0] += 1.0 - f
        m[o, i1] += f
    return m


def _up_pad_halo_matrix(n_in, n_target):
    """(n_target+2, n_in): x2 align_corners upsample, F.pad-centre to n_target, +1 halo."""
    up = _axis_upsample_matrix(n_in)            # (2*n_in, n_in)
    diff = n_target - 2 * n_in
    assert diff >= 0, "negative F.pad (crop) not supported"  # TODO(synk): crop case
    off = diff // 2
    m = np.zeros((n_target + 2, n_in), np.float32)
    m[1 + off: 1 + off + 2 * n_in, :] = up
    return m


def _conv_weight_matrix(w):
    """torch-layout (Cout, Cin, 3, 3) -> (Cout, 9*Cin), columns ordered (dy, dx, cin)."""
    cout, cin = w.shape[0], w.shape[1]
    return jnp.transpose(w, (2, 3, 1, 0)).reshape(9 * cin, cout).T


# ------------------------------ wrapper ---------------------------------------
def up_forward(x1, x2, params, *, grid_steps=None):
    """Forward pass of `up` (bilinear / no-BN / no-dropout). NCHW in, NCHW out."""
    N, C1, H1, W1 = x1.shape
    N2, C2, H2, W2 = x2.shape
    assert N == N2
    Cout, Cin = params["w1"].shape[0], params["w1"].shape[1]
    assert Cin == C1 + C2
    Hp, Wp = H2 + 2, W2 + 2
    P = Hp * Wp
    Pp = ((P + 127) // 128) * 128          # lane-pad each image frame to whole vregs
    HW1 = H1 * W1

    if grid_steps is None:
        # 2 steps = one image-batch per v7x TensorCore (megacore "parallel").  On the
        # single-TC v5e/v6e pass grid_steps=1 to fold all images onto lanes instead.
        grid_steps = 2 if (N >= 2 and N % 2 == 0) else 1
    assert N % grid_steps == 0
    ips = N // grid_steps                   # images per grid step, batched on lanes

    # ---- trace-time constants (tiny, grid-invariant) ----
    uh = _up_pad_halo_matrix(H1, H2)        # (Hp, H1)
    uw = _up_pad_halo_matrix(W1, W2)        # (Wp, W1)
    g1t_np = np.zeros((HW1, Pp), np.float32)
    g1t_np[:, :P] = np.kron(uh, uw).T       # upsample + pad + halo stencil (x1 path)
    g1t = jnp.asarray(g1t_np).astype(jnp.bfloat16)

    ii = np.repeat(np.arange(H2), W2)
    jj = np.tile(np.arange(W2), H2)
    mask_np = np.zeros((1, Pp), np.float32)
    mask_np[0, ii * Wp + jj] = 1.0          # valid conv-output anchors (i*Wp + j)
    mask = jnp.asarray(np.tile(mask_np, (1, ips)))       # (1, ips*Pp)

    w1m = _conv_weight_matrix(params["w1"]).astype(jnp.bfloat16)
    w2m = _conv_weight_matrix(params["w2"]).astype(jnp.bfloat16)
    b1 = params["b1"].reshape(Cout, 1).astype(jnp.float32)
    b2 = params["b2"].reshape(Cout, 1).astype(jnp.float32)

    # ---- layout plumbing (cheap XLA ops on a few KB, presents lane-dense slabs) ----
    # x2 goes in already in its padded-frame layout -> no in-kernel placement copy.
    x2f = jnp.pad(x2, ((0, 0), (0, 0), (1, 1), (1, 1))).reshape(N, C2, P)
    x2f = jnp.pad(x2f, ((0, 0), (0, 0), (0, Pp - P)))
    x2f = (x2f.reshape(grid_steps, ips, C2, Pp).transpose(0, 2, 1, 3)
              .reshape(grid_steps, C2, ips * Pp).astype(jnp.bfloat16))
    x1f = (x1.reshape(grid_steps, ips, C1, HW1).transpose(0, 2, 1, 3)
             .reshape(grid_steps, C1, ips * HW1).astype(jnp.bfloat16))

    kernel = functools.partial(_fused_up_kernel, Wp=Wp, Pp=Pp, HW1=HW1, ips=ips)
    out_frames = pl.pallas_call(
        kernel,
        out_shape=jax.ShapeDtypeStruct((grid_steps, Cout, ips * Pp), x2.dtype),
        grid=(grid_steps,),
        in_specs=[
            pl.BlockSpec((1, C1, ips * HW1), lambda g: (g, 0, 0)),
            pl.BlockSpec((1, C2, ips * Pp), lambda g: (g, 0, 0)),
            pl.BlockSpec((HW1, Pp), lambda g: (0, 0)),     # grid-invariant constants:
            pl.BlockSpec((1, ips * Pp), lambda g: (0, 0)),  # same block index each step
            pl.BlockSpec((Cout, 9 * Cin), lambda g: (0, 0)),
            pl.BlockSpec((Cout, 1), lambda g: (0, 0)),
            pl.BlockSpec((Cout, 9 * Cout), lambda g: (0, 0)),
            pl.BlockSpec((Cout, 1), lambda g: (0, 0)),
        ],
        out_specs=pl.BlockSpec((1, Cout, ips * Pp), lambda g: (g, 0, 0)),
        compiler_params=pltpu.CompilerParams(dimension_semantics=("parallel",)),
    )(x1f, x2f, g1t, mask, w1m, b1, w2m, b2)

    # Strip the frame halo / lane padding: pure layout slice on HBM, replaces the old
    # in-kernel extraction matmul.
    out = (out_frames.reshape(grid_steps, Cout, ips, Pp).transpose(0, 2, 1, 3)
                     .reshape(N, Cout, Pp)[:, :, :P]
                     .reshape(N, Cout, Hp, Wp)[:, :, :H2, :W2])
    return out


# ------------------------- pure-JAX reference (check) -------------------------
def _reference_up_forward(x1, x2, params):
    N, C1, H1, W1 = x1.shape
    H2, W2 = x2.shape[2], x2.shape[3]
    Ho, Wo = 2 * H1, 2 * W1
    ys = jnp.arange(Ho, dtype=jnp.float32) * ((H1 - 1) / (Ho - 1))
    xs = jnp.arange(Wo, dtype=jnp.float32) * ((W1 - 1) / (Wo - 1))
    y0 = jnp.floor(ys).astype(jnp.int32)
    x0 = jnp.floor(xs).astype(jnp.int32)
    y1i = jnp.minimum(y0 + 1, H1 - 1)
    x1i = jnp.minimum(x0 + 1, W1 - 1)
    wy = (ys - y0.astype(jnp.float32))[None, None, :, None]
    wx = (xs - x0.astype(jnp.float32))[None, None, None, :]
    g00 = x1[:, :, y0][:, :, :, x0]
    g01 = x1[:, :, y0][:, :, :, x1i]
    g10 = x1[:, :, y1i][:, :, :, x0]
    g11 = x1[:, :, y1i][:, :, :, x1i]
    up = (g00 * (1 - wy) * (1 - wx) + g01 * (1 - wy) * wx
          + g10 * wy * (1 - wx) + g11 * wy * wx)
    dY, dX = H2 - Ho, W2 - Wo
    up = jnp.pad(up, ((0, 0), (0, 0), (dY // 2, dY - dY // 2), (dX // 2, dX - dX // 2)))
    x = jnp.concatenate([x2, up], axis=1)

    def conv_lrelu(x, w, b):
        y = jax.lax.conv_general_dilated(
            x, w, window_strides=(1, 1), padding=((1, 1), (1, 1)),
            dimension_numbers=("NCHW", "OIHW", "NCHW"),
            precision=jax.lax.Precision.HIGHEST)
        y = y + b[None, :, None, None]
        return jnp.where(y >= 0, y, LEAKY_SLOPE * y)

    x = conv_lrelu(x, params["w1"], params["b1"])
    x = conv_lrelu(x, params["w2"], params["b2"])
    return x


def init_params(key, in_ch, out_ch):
    """Deterministic parameter init matching the module's shapes (torch OIHW layout)."""
    k1, k2, k3, k4 = jax.random.split(key, 4)
    s1 = 1.0 / float(np.sqrt(in_ch * 9.0))
    s2 = 1.0 / float(np.sqrt(out_ch * 9.0))
    return {
        "w1": jax.random.uniform(k1, (out_ch, in_ch, 3, 3), jnp.float32, -s1, s1),
        "b1": jax.random.uniform(k2, (out_ch,), jnp.float32, -s1, s1),
        "w2": jax.random.uniform(k3, (out_ch, out_ch, 3, 3), jnp.float32, -s2, s2),
        "b2": jax.random.uniform(k4, (out_ch,), jnp.float32, -s2, s2),
    }


if __name__ == "__main__":
    # up(in_ch=8, out_ch=4, upmode='bilinear', batchnorm=False, dropout=None)
    in_ch, out_ch = 8, 4
    N, H1, W1 = 2, 8, 8
    H2, W2 = 2 * H1, 2 * W1

    key = jax.random.PRNGKey(0)
    kx1, kx2, kp = jax.random.split(key, 3)
    x1 = jax.random.normal(kx1, (N, in_ch // 2, H1, W1), jnp.float32)     # NCHW
    x2 = jax.random.normal(kx2, (N, in_ch // 2, H2, W2), jnp.float32)     # NCHW skip
    params = init_params(kp, in_ch, out_ch)

    out = jax.jit(up_forward)(x1, x2, params)
    jax.block_until_ready(out)
    assert out.shape == (N, out_ch, H2, W2), out.shape

    ref = _reference_up_forward(x1, x2, params)
    np.testing.assert_allclose(np.asarray(out), np.asarray(ref), rtol=5e-2, atol=5e-2)
    print("KERNEL_OK")
</pallas_src>

<mosaic_0001>
module attributes {stable_mosaic.version = 11 : i64} {
  func.func @_fused_up_kernel(%arg0: i32, %arg1: memref<1x4x64xbf16, #tpu.memory_space<vmem>>, %arg2: memref<1x4x384xbf16, #tpu.memory_space<vmem>>, %arg3: memref<64x384xbf16, #tpu.memory_space<vmem>>, %arg4: memref<1x384xf32, #tpu.memory_space<vmem>>, %arg5: memref<4x72xbf16, #tpu.memory_space<vmem>>, %arg6: memref<4x1xf32, #tpu.memory_space<vmem>>, %arg7: memref<4x36xbf16, #tpu.memory_space<vmem>>, %arg8: memref<4x1xf32, #tpu.memory_space<vmem>>, %arg9: memref<1x4x384xf32, #tpu.memory_space<vmem>>) attributes {dimension_semantics = [#tpu.dimension_semantics<parallel>], iteration_bounds = array<i64: 2>, scalar_prefetch = 0 : i64, scratch_operands = 0 : i64, tpu.core_type = #tpu.core_type<tc>, window_params = [{transform_indices = @transform_0, window_bounds = array<i64: 1, 4, 64>}, {transform_indices = @transform_1, window_bounds = array<i64: 1, 4, 384>}, {pipeline_mode = #tpu.pipeline_mode<synchronous>, transform_indices = @transform_2, window_bounds = array<i64: 64, 384>}, {pipeline_mode = #tpu.pipeline_mode<synchronous>, transform_indices = @transform_3, window_bounds = array<i64: 1, 384>}, {pipeline_mode = #tpu.pipeline_mode<synchronous>, transform_indices = @transform_4, window_bounds = array<i64: 4, 72>}, {pipeline_mode = #tpu.pipeline_mode<synchronous>, transform_indices = @transform_5, window_bounds = array<i64: 4, 1>}, {pipeline_mode = #tpu.pipeline_mode<synchronous>, transform_indices = @transform_6, window_bounds = array<i64: 4, 36>}, {pipeline_mode = #tpu.pipeline_mode<synchronous>, transform_indices = @transform_7, window_bounds = array<i64: 4, 1>}, {transform_indices = @transform_8, window_bounds = array<i64: 1, 4, 384>}]} {
    %c0 = arith.constant 0 : index
    %c0_0 = arith.constant 0 : index
    %c0_1 = arith.constant 0 : index
    %0 = vector.load %arg1[%c0, %c0_0, %c0_1] : memref<1x4x64xbf16, #tpu.memory_space<vmem>>, vector<1x4x64xbf16>
    %1 = vector.shape_cast %0 : vector<1x4x64xbf16> to vector<4x64xbf16>
    %c0_2 = arith.constant 0 : index
    %c0_3 = arith.constant 0 : index
    %2 = vector.load %arg3[%c0_2, %c0_3] : memref<64x384xbf16, #tpu.memory_space<vmem>>, vector<64x384xbf16>
    %cst = arith.constant dense<0.000000e+00> : vector<4x384xf32>
    %3 = tpu.matmul %1, %2, %cst {dimension_numbers = #tpu.dot_dimension_numbers<[1], [0], [0], [1], [0, 0, 1, 1], [], []>} : vector<4x64xbf16>, vector<64x384xbf16>, vector<4x384xf32> -> vector<4x384xf32>
    %c0_4 = arith.constant 0 : index
    %c0_5 = arith.constant 0 : index
    %c0_6 = arith.constant 0 : index
    %4 = vector.load %arg2[%c0_4, %c0_5, %c0_6] : memref<1x4x384xbf16, #tpu.memory_space<vmem>>, vector<1x4x384xbf16>
    %5 = vector.shape_cast %4 : vector<1x4x384xbf16> to vector<4x384xbf16>
    %6 = arith.truncf %3 : vector<4x384xf32> to vector<4x384xbf16>
    %7 = tpu.concatenate %5, %6 in 0 : vector<4x384xbf16>, vector<4x384xbf16> -> vector<8x384xbf16>
    %8 = vector.extract_strided_slice %7 {offsets = [0, 1], sizes = [8, 383], strides = [1, 1]} : vector<8x384xbf16> to vector<8x383xbf16>
    %9 = vector.extract_strided_slice %7 {offsets = [0, 0], sizes = [8, 1], strides = [1, 1]} : vector<8x384xbf16> to vector<8x1xbf16>
    %10 = tpu.concatenate %8, %9 in 1 : vector<8x383xbf16>, vector<8x1xbf16> -> vector<8x384xbf16>
    %11 = vector.extract_strided_slice %7 {offsets = [0, 2], sizes = [8, 382], strides = [1, 1]} : vector<8x384xbf16> to vector<8x382xbf16>
    %12 = vector.extract_strided_slice %7 {offsets = [0, 0], sizes = [8, 2], strides = [1, 1]} : vector<8x384xbf16> to vector<8x2xbf16>
    %13 = tpu.concatenate %11, %12 in 1 : vector<8x382xbf16>, vector<8x2xbf16> -> vector<8x384xbf16>
    %14 = vector.extract_strided_slice %7 {offsets = [0, 18], sizes = [8, 366], strides = [1, 1]} : vector<8x384xbf16> to vector<8x366xbf16>
    %15 = vector.extract_strided_slice %7 {offsets = [0, 0], sizes = [8, 18], strides = [1, 1]} : vector<8x384xbf16> to vector<8x18xbf16>
    %16 = tpu.concatenate %14, %15 in 1 : vector<8x366xbf16>, vector<8x18xbf16> -> vector<8x384xbf16>
    %17 = vector.extract_strided_slice %7 {offsets = [0, 19], sizes = [8, 365], strides = [1, 1]} : vector<8x384xbf16> to vector<8x365xbf16>
    %18 = vector.extract_strided_slice %7 {offsets = [0, 0], sizes = [8, 19], strides = [1, 1]} : vector<8x384xbf16> to vector<8x19xbf16>
    %19 = tpu.concatenate %17, %18 in 1 : vector<8x365xbf16>, vector<8x19xbf16> -> vector<8x384xbf16>
    %20 = vector.extract_strided_slice %7 {offsets = [0, 20], sizes = [8, 364], strides = [1, 1]} : vector<8x384xbf16> to vector<8x364xbf16>
    %21 = vector.extract_strided_slice %7 {offsets = [0, 0], sizes = [8, 20], strides = [1, 1]} : vector<8x384xbf16> to vector<8x20xbf16>
    %22 = tpu.concatenate %20, %21 in 1 : vector<8x364xbf16>, vector<8x20xbf16> -> vector<8x384xbf16>
    %23 = vector.extract_strided_slice %7 {offsets = [0, 36], sizes = [8, 348], strides = [1, 1]} : vector<8x384xbf16> to vector<8x348xbf16>
    %24 = vector.extract_strided_slice %7 {offsets = [0, 0], sizes = [8, 36], strides = [1, 1]} : vector<8x384xbf16> to vector<8x36xbf16>
    %25 = tpu.concatenate %23, %24 in 1 : vector<8x348xbf16>, vector<8x36xbf16> -> vector<8x384xbf16>
    %26 = vector.extract_strided_slice %7 {offsets = [0, 37], sizes = [8, 347], strides = [1, 1]} : vector<8x384xbf16> to vector<8x347xbf16>
    %27 = vector.extract_strided_slice %7 {offsets = [0, 0], sizes = [8, 37], strides = [1, 1]} : vector<8x384xbf16> to vector<8x37xbf16>
    %28 = tpu.concatenate %26, %27 in 1 : vector<8x347xbf16>, vector<8x37xbf16> -> vector<8x384xbf16>
    %29 = vector.extract_strided_slice %7 {offsets = [0, 38], sizes = [8, 346], strides = [1, 1]} : vector<8x384xbf16> to vector<8x346xbf16>
    %30 = vector.extract_strided_slice %7 {offsets = [0, 0], sizes = [8, 38], strides = [1, 1]} : vector<8x384xbf16> to vector<8x38xbf16>
    %31 = tpu.concatenate %29, %30 in 1 : vector<8x346xbf16>, vector<8x38xbf16> -> vector<8x384xbf16>
    %32 = tpu.concatenate %7, %10, %13, %16, %19, %22, %25, %28, %31 in 0 : vector<8x384xbf16>, vector<8x384xbf16>, vector<8x384xbf16>, vector<8x384xbf16>, vector<8x384xbf16>, vector<8x384xbf16>, vector<8x384xbf16>, vector<8x384xbf16>, vector<8x384xbf16> -> vector<72x384xbf16>
    %c0_7 = arith.constant 0 : index
    %c0_8 = arith.constant 0 : index
    %33 = vector.load %arg6[%c0_7, %c0_8] : memref<4x1xf32, #tpu.memory_space<vmem>>, vector<4x1xf32>
    %c0_9 = arith.constant 0 : index
    %c0_10 = arith.constant 0 : index
    %34 = vector.load %arg5[%c0_9, %c0_10] : memref<4x72xbf16, #tpu.memory_space<vmem>>, vector<4x72xbf16>
    %cst_11 = arith.constant dense<0.000000e+00> : vector<4x384xf32>
    %35 = tpu.matmul %34, %32, %cst_11 {dimension_numbers = #tpu.dot_dimension_numbers<[1], [0], [0], [1], [0, 0, 1, 1], [], []>} : vector<4x72xbf16>, vector<72x384xbf16>, vector<4x384xf32> -> vector<4x384xf32>
    %36 = vector.broadcast %33 : vector<4x1xf32> to vector<4x384xf32>
    %37 = arith.addf %36, %35 : vector<4x384xf32>
    %cst_12 = arith.constant 0.000000e+00 : f32
    %38 = vector.broadcast %cst_12 : f32 to vector<4x384xf32>
    %39 = arith.cmpf oge, %37, %38 : vector<4x384xf32>
    %cst_13 = arith.constant 0.00999999977 : f32
    %40 = vector.broadcast %cst_13 : f32 to vector<4x384xf32>
    %41 = arith.mulf %40, %37 : vector<4x384xf32>
    %42 = arith.select %39, %37, %41 : vector<4x384xi1>, vector<4x384xf32>
    %c0_14 = arith.constant 0 : index
    %c0_15 = arith.constant 0 : index
    %43 = vector.load %arg4[%c0_14, %c0_15] : memref<1x384xf32, #tpu.memory_space<vmem>>, vector<1x384xf32>
    %44 = vector.broadcast %43 : vector<1x384xf32> to vector<4x384xf32>
    %45 = arith.mulf %42, %44 : vector<4x384xf32>
    %46 = vector.extract_strided_slice %45 {offsets = [0, 365], sizes = [4, 19], strides = [1, 1]} : vector<4x384xf32> to vector<4x19xf32>
    %47 = vector.extract_strided_slice %45 {offsets = [0, 0], sizes = [4, 365], strides = [1, 1]} : vector<4x384xf32> to vector<4x365xf32>
    %48 = tpu.concatenate %46, %47 in 1 : vector<4x19xf32>, vector<4x365xf32> -> vector<4x384xf32>
    %49 = arith.truncf %48 : vector<4x384xf32> to vector<4x384xbf16>
    %50 = vector.extract_strided_slice %49 {offsets = [0, 1], sizes = [4, 383], strides = [1, 1]} : vector<4x384xbf16> to vector<4x383xbf16>
    %51 = vector.extract_strided_slice %49 {offsets = [0, 0], sizes = [4, 1], strides = [1, 1]} : vector<4x384xbf16> to vector<4x1xbf16>
    %52 = tpu.concatenate %50, %51 in 1 : vector<4x383xbf16>, vector<4x1xbf16> -> vector<4x384xbf16>
    %53 = vector.extract_strided_slice %49 {offsets = [0, 2], sizes = [4, 382], strides = [1, 1]} : vector<4x384xbf16> to vector<4x382xbf16>
    %54 = vector.extract_strided_slice %49 {offsets = [0, 0], sizes = [4, 2], strides = [1, 1]} : vector<4x384xbf16> to vector<4x2xbf16>
    %55 = tpu.concatenate %53, %54 in 1 : vector<4x382xbf16>, vector<4x2xbf16> -> vector<4x384xbf16>
    %56 = vector.extract_strided_slice %49 {offsets = [0, 18], sizes = [4, 366], strides = [1, 1]} : vector<4x384xbf16> to vector<4x366xbf16>
    %57 = vector.extract_strided_slice %49 {offsets = [0, 0], sizes = [4, 18], strides = [1, 1]} : vector<4x384xbf16> to vector<4x18xbf16>
    %58 = tpu.concatenate %56, %57 in 1 : vector<4x366xbf16>, vector<4x18xbf16> -> vector<4x384xbf16>
    %59 = vector.extract_strided_slice %49 {offsets = [0, 19], sizes = [4, 365], strides = [1, 1]} : vector<4x384xbf16> to vector<4x365xbf16>
    %60 = vector.extract_strided_slice %49 {offsets = [0, 0], sizes = [4, 19], strides = [1, 1]} : vector<4x384xbf16> to vector<4x19xbf16>
    %61 = tpu.concatenate %59, %60 in 1 : vector<4x365xbf16>, vector<4x19xbf16> -> vector<4x384xbf16>
    %62 = vector.extract_strided_slice %49 {offsets = [0, 20], sizes = [4, 364], strides = [1, 1]} : vector<4x384xbf16> to vector<4x364xbf16>
    %63 = vector.extract_strided_slice %49 {offsets = [0, 0], sizes = [4, 20], strides = [1, 1]} : vector<4x384xbf16> to vector<4x20xbf16>
    %64 = tpu.concatenate %62, %63 in 1 : vector<4x364xbf16>, vector<4x20xbf16> -> vector<4x384xbf16>
    %65 = vector.extract_strided_slice %49 {offsets = [0, 36], sizes = [4, 348], strides = [1, 1]} : vector<4x384xbf16> to vector<4x348xbf16>
    %66 = vector.extract_strided_slice %49 {offsets = [0, 0], sizes = [4, 36], strides = [1, 1]} : vector<4x384xbf16> to vector<4x36xbf16>
    %67 = tpu.concatenate %65, %66 in 1 : vector<4x348xbf16>, vector<4x36xbf16> -> vector<4x384xbf16>
    %68 = vector.extract_strided_slice %49 {offsets = [0, 37], sizes = [4, 347], strides = [1, 1]} : vector<4x384xbf16> to vector<4x347xbf16>
    %69 = vector.extract_strided_slice %49 {offsets = [0, 0], sizes = [4, 37], strides = [1, 1]} : vector<4x384xbf16> to vector<4x37xbf16>
    %70 = tpu.concatenate %68, %69 in 1 : vector<4x347xbf16>, vector<4x37xbf16> -> vector<4x384xbf16>
    %71 = vector.extract_strided_slice %49 {offsets = [0, 38], sizes = [4, 346], strides = [1, 1]} : vector<4x384xbf16> to vector<4x346xbf16>
    %72 = vector.extract_strided_slice %49 {offsets = [0, 0], sizes = [4, 38], strides = [1, 1]} : vector<4x384xbf16> to vector<4x38xbf16>
    %73 = tpu.concatenate %71, %72 in 1 : vector<4x346xbf16>, vector<4x38xbf16> -> vector<4x384xbf16>
    %74 = tpu.concatenate %49, %52, %55, %58, %61, %64, %67, %70, %73 in 0 : vector<4x384xbf16>, vector<4x384xbf16>, vector<4x384xbf16>, vector<4x384xbf16>, vector<4x384xbf16>, vector<4x384xbf16>, vector<4x384xbf16>, vector<4x384xbf16>, vector<4x384xbf16> -> vector<36x384xbf16>
    %c0_16 = arith.constant 0 : index
    %c0_17 = arith.constant 0 : index
    %75 = vector.load %arg8[%c0_16, %c0_17] : memref<4x1xf32, #tpu.memory_space<vmem>>, vector<4x1xf32>
    %c0_18 = arith.constant 0 : index
    %c0_19 = arith.constant 0 : index
    %76 = vector.load %arg7[%c0_18, %c0_19] : memref<4x36xbf16, #tpu.memory_space<vmem>>, vector<4x36xbf16>
    %cst_20 = arith.constant dense<0.000000e+00> : vector<4x384xf32>
    %77 = tpu.matmul %76, %74, %cst_20 {dimension_numbers = #tpu.dot_dimension_numbers<[1], [0], [0], [1], [0, 0, 1, 1], [], []>} : vector<4x36xbf16>, vector<36x384xbf16>, vector<4x384xf32> -> vector<4x384xf32>
    %78 = vector.broadcast %75 : vector<4x1xf32> to vector<4x384xf32>
    %79 = arith.addf %78, %77 : vector<4x384xf32>
    %cst_21 = arith.constant 0.000000e+00 : f32
    %80 = vector.broadcast %cst_21 : f32 to vector<4x384xf32>
    %81 = arith.cmpf oge, %79, %80 : vector<4x384xf32>
    %cst_22 = arith.constant 0.00999999977 : f32
    %82 = vector.broadcast %cst_22 : f32 to vector<4x384xf32>
    %83 = arith.mulf %82, %79 : vector<4x384xf32>
    %84 = arith.select %81, %79, %83 : vector<4x384xi1>, vector<4x384xf32>
    %c0_23 = arith.constant 0 : index
    %c0_24 = arith.constant 0 : index
    %c0_25 = arith.constant 0 : index
    %85 = vector.load %arg9[%c0_23, %c0_24, %c0_25] : memref<1x4x384xf32, #tpu.memory_space<vmem>>, vector<1x4x384xf32>
    %86 = vector.shape_cast %85 : vector<1x4x384xf32> to vector<4x384xf32>
    %87 = vector.shape_cast %84 : vector<4x384xf32> to vector<1x4x384xf32>
    tpu.vector_store %arg9[%c0_23, %c0_24, %c0_25], %87 {strides = array<i32>} : memref<1x4x384xf32, #tpu.memory_space<vmem>>, vector<1x4x384xf32>,
    return
  }
  func.func @transform_0(%arg0: i32) -> (i32, i32, i32) {
    %c0_i32 = arith.constant 0 : i32
    %c0_i32_0 = arith.constant 0 : i32
    %c0_i32_1 = arith.constant 0 : i32
    return %arg0, %c0_i32, %c0_i32_0 : i32, i32, i32
  }
  func.func @transform_1(%arg0: i32) -> (i32, i32, i32) {
    %c0_i32 = arith.constant 0 : i32
    %c0_i32_0 = arith.constant 0 : i32
    %c0_i32_1 = arith.constant 0 : i32
    return %arg0, %c0_i32, %c0_i32_0 : i32, i32, i32
  }
  func.func @transform_2(%arg0: i32) -> (i32, i32) {
    %c0_i32 = arith.constant 0 : i32
    %c0_i32_0 = arith.constant 0 : i32
    %c0_i32_1 = arith.constant 0 : i32
    return %c0_i32, %c0_i32_0 : i32, i32
  }
  func.func @transform_3(%arg0: i32) -> (i32, i32) {
    %c0_i32 = arith.constant 0 : i32
    %c0_i32_0 = arith.constant 0 : i32
    %c0_i32_1 = arith.constant 0 : i32
    return %c0_i32, %c0_i32_0 : i32, i32
  }
  func.func @transform_4(%arg0: i32) -> (i32, i32) {
    %c0_i32 = arith.constant 0 : i32
    %c0_i32_0 = arith.constant 0 : i32
    %c0_i32_1 = arith.constant 0 : i32
    return %c0_i32, %c0_i32_0 : i32, i32
  }
  func.func @transform_5(%arg0: i32) -> (i32, i32) {
    %c0_i32 = arith.constant 0 : i32
    %c0_i32_0 = arith.constant 0 : i32
    %c0_i32_1 = arith.constant 0 : i32
    return %c0_i32, %c0_i32_0 : i32, i32
  }
  func.func @transform_6(%arg0: i32) -> (i32, i32) {
    %c0_i32 = arith.constant 0 : i32
    %c0_i32_0 = arith.constant 0 : i32
    %c0_i32_1 = arith.constant 0 : i32
    return %c0_i32, %c0_i32_0 : i32, i32
  }
  func.func @transform_7(%arg0: i32) -> (i32, i32) {
    %c0_i32 = arith.constant 0 : i32
    %c0_i32_0 = arith.constant 0 : i32
    %c0_i32_1 = arith.constant 0 : i32
    return %c0_i32, %c0_i32_0 : i32, i32
  }
  func.func @transform_8(%arg0: i32) -> (i32, i32, i32) {
    %c0_i32 = arith.constant 0 : i32
    %c0_i32_0 = arith.constant 0 : i32
    %c0_i32_1 = arith.constant 0 : i32
    return %arg0, %c0_i32, %c0_i32_0 : i32, i32, i32
  }
}

</mosaic_0001>

<bundles_post_ra>
// kernel: up_forward.1
= control target key start
LH: loop header
LB: loop body
LE: loop exit
PB: predicated region body
PF: predicated region fallthrough
CT: control target
= control target key end

     0   :  { %s1386_s27 = smov 0   ;;  %s1652_s0 = inlined_call_operand.vmem [shape: bf16[2,4,64], index: 0, kind: input, shape index: {}]   ;;  %s1653_s1 = inlined_call_operand.vmem [shape: bf16[2,4,384], index: 1, kind: input, shape index: {}]   ;;  %s1654_s2 = inlined_call_operand.vmem [shape: bf16[64,384], index: 2, kind: input, shape index: {}]   ;;  %s1655_s3 = inlined_call_operand.vmem [shape: f32[1,384], index: 3, kind: input, shape index: {}]   ;;  %s1656_s4 = inlined_call_operand.vmem [shape: bf16[4,72], index: 4, kind: input, shape index: {}]   ;;  %s1657_s5 = inlined_call_operand.vmem [shape: f32[4,1], index: 5, kind: input, shape index: {}]   ;;  %s1658_s6 = inlined_call_operand.vmem [shape: bf16[4,36], index: 6, kind: input, shape index: {}]   ;;  %s1659_s7 = inlined_call_operand.vmem [shape: f32[4,1], index: 7, kind: input, shape index: {}]   ;;  %s1660_s8 = inlined_call_operand.vmem [shape: f32[2,4,384], index: 8, kind: output, shape index: {}]  }
   0x1 LB: > { %s1193_s28 = sadd.s32 4294967295, %s1326_s27   ;;  %p1197_p0 = scmp.ge.s32.totalorder %s1326_s27, 1  ;;  %s1326_s27 = sphi %s1386_s27, %s18_s27  }
   0x2   : > { %p271_p1 = scmp.lt.s32.totalorder %s1326_s27, 3 }
   0x4   : > { %p272_p2 = pnand %p1197_p0, %p271_p1 }
   0x5   : > { %v1328_v0 = vmov (!%p272_p2), 0.0   ;;  %v1303_v1 = vld [vmem:[%s1654_s2 + $0x8] ss:$12 sps:$4 sm:$0xff] (!%p272_p2)   ;;  %v1305_v2 = vld [vmem:[%s1654_s2 + $0x4] ss:$12 sps:$4 sm:$0xff] (!%p272_p2)   ;;  %vm1329_vm0 = vmmov (!%p272_p2), 0   ;;  %v499_v17 = vlaneseq (!%p272_p2) }
   0x6   : > { %275 = sbr.rel (%p272_p2) target bundleno = 1131 (0x46b), region = 52  ;;  %1238 = vmatprep.subr.bf16.mxu1 (!%p272_p2), %v1328_v0  ;;  %v1304_v3 = vld [vmem:[%s1654_s2 + $0x20] ss:$12 sps:$4 sm:$0xff] (!%p272_p2)   ;;  %1246 = vmatprep.mubr.msk.bf16.mxu1 (!%p272_p2), %vm1329_vm0, %v1328_v0  ;;  %p309_p3 = scmp.lt.s32.totalorder (!%p272_p2), %s1193_s28, 1  ;;  %v1309_v5 = vld [vmem:[%s1654_s2 + $0x1c] ss:$12 sps:$4 sm:$0xff] (!%p272_p2)  }
   0x7   : > { %1239 = vmatpush3.bf16.msra.mxu1 (!%p272_p2), %v1303_v1  ;;  %409 = vmatprep.subr.bf16.mxu0 (!%p272_p2), %v1305_v2  ;;  %v1308_v4 = vld [vmem:[%s1654_s2] ss:$12 sps:$4 sm:$0xff] (!%p272_p2)   ;;  %v1312_v6 = vld [vmem:[%s1654_s2 + $0x18] ss:$12 sps:$4 sm:$0xff] (!%p272_p2)   ;;  %v1330_v9 = vmov (!%p272_p2), 0   ;;  %vm405_vm1 = vcmask (!%p272_p2), 523264  }
   0x8   : > { %1240 = vmatprep.subr.bf16.mxu1 (!%p272_p2), %v1328_v0  ;;  %410 = vmatpush1.bf16.msra.mxu0 (!%p272_p2), %v1308_v4  ;;  %v1307_v7 = vld [vmem:[%s1654_s2 + $0x38] ss:$12 sps:$4 sm:$0xff] (!%p272_p2)   ;;  %v1313_v8 = vld [vmem:[%s1654_s2 + $0x34] ss:$12 sps:$4 sm:$0xff] (!%p272_p2)   ;;  %v1315_v10 = vld [vmem:[%s1654_s2 + $0x30] ss:$12 sps:$4 sm:$0xff] (!%p272_p2)  }
   0x9   : > { %411 = vmatprep.subr.bf16.mxu0 (!%p272_p2), %v1309_v5  ;;  %441 = vmatprep.mubr.bf16.mxu0 (!%p272_p2), %v1330_v9  ;;  %v1311_v11 = vld [vmem:[%s1654_s2 + $0x50] ss:$12 sps:$4 sm:$0xff] (!%p272_p2)   ;;  %v1316_v12 = vld [vmem:[%s1654_s2 + $0x4c] ss:$12 sps:$4 sm:$0xff] (!%p272_p2)   ;;  %v1318_v13 = vld [vmem:[%s1654_s2 + $0x48] ss:$12 sps:$4 sm:$0xff] (!%p272_p2)  }
   0xa   : > { %1297 = vset.pattern.permute.xlu0 (!%p272_p2), %v1330_v9  ;;  %v1331_v15 = vmov (!%p272_p2), 1983009808   ;;  %v1452_v19 = vshrl.u32 (!%p272_p2), %v499_v17, 7  ;;  %vm517_vm2 = vcmask (!%p272_p2), 1041408   ;;  %s1332_s19 = smov (!%p272_p2), 126   ;;  %s1333_s20 = smov (!%p272_p2), 127  }
   0xb   : > { %1241 = vmatpush3.bf16.msra.mxu1 (!%p272_p2), %v1304_v3  ;;  %v497_v16 = vunpack.c.l.s4 (!%p272_p2), %v1331_v15  ;;  %s1334_s21 = smov (!%p272_p2), 109   ;;  %s1335_s22 = smov (!%p272_p2), 110   ;;  %v693_v43 = vld [vmem:[%s1657_s5] sm:$0xf] (!%p272_p2)  ;;  %vm536_vm3 = vcmask (!%p272_p2), 1039360   ;;  %vm650_vm4 = vcmask (!%p272_p2), 1043456  }
   0xc   : > { %1242 = vmatprep.subr.bf16.mxu1 (!%p272_p2), %v1328_v0  ;;  %412 = vmatpush1.bf16.msra.mxu0 (!%p272_p2), %v1312_v6  ;;  %s1337_s24 = smov (!%p272_p2), 108   ;;  %s1338_s25 = smov (!%p272_p2), 91   ;;  %vm562_vm5 = vcmask (!%p272_p2), 900096   ;;  %vm549_vm6 = vcmask (!%p272_p2), 1031168   ;;  %vm588_vm7 = vcmask (!%p272_p2), 883712   ;;  %vm575_vm8 = vcmask (!%p272_p2), 891904  }
   0xd   : > { %s1662_s28 = smov (!%p309_p3, %s1193_s28), 1  ;;  %413 = vmatprep.subr.bf16.mxu0 %v1313_v8  ;;  %v498_v18 = vunpack.c.0.s8 %v497_v16  ;;  %s1339_s26 = smov 90   ;;  %vm614_vm9 = vcmask 744448   ;;  %vm601_vm10 = vcmask 752640   ;;  %vm627_vm11 = vcmask 736256  }
   0xe   : > { %s1198_s23 = sshll.u32 %s1662_s28, 1  ;;  %s1274_s15 = smul.u32 6, %s1662_s28  ;;  %vm695_vm12 = vcmask 588800  }
   0xf   : > { %1243 = vmatpush3.bf16.msra.mxu1 %v1307_v7  ;;  %s312_s12 = scalar_lea.vmem %s1652_s0, %s1198_s23  ;;  %v501_v22 = vsub.s32 %v498_v18, %v1452_v19  ;;  %s1336_s23 = smov 92  }
  0x10   : > { %1244 = vmatprep.subr.bf16.mxu1 %v1328_v0  ;;  %414 = vmatpush1.bf16.msra.mxu0 %v1315_v10  ;;  %v324_v14 = vld [vmem:[%s312_s12] sm:$0x3]  ;;  %s317_s18 = scalar_lea.vmem %s1653_s1, %s1274_s15  ;;  %s1340_s13 = smov 19  }
  0x11   : > { %415 = vmatprep.subr.bf16.mxu0 %v1316_v12  ;;  %v490_v20 = vld [vmem:[%s317_s18] sm:$0x3f]  ;;  %s1275_s18 = smul.u32 12, %s1662_s28 }
  0x12   : > { %v495_v21 = vcombine.high %v490_v20, %v490_v20  ;;  %v502_v37 = vrot.slane %v490_v20, %v501_v22 }
  0x13   : > { %1245 = vmatpush3.bf16.msra.mxu1 %v1311_v11 }
  0x14   : > { %1250 = vmatprep.subr.bf16.mxu1 %v1328_v0  ;;  %416 = vmatpush1.bf16.msra.mxu0 %v1318_v13  ;;  %v509_v25 = vrot.slane %v495_v21, %v501_v22  ;;  %v510_v40 = vcombine.high %v502_v37, %v502_v37 }
  0x16   : > { %1247 = vmatmul.mubr.msk.bf16.vlgmr.msra.gmra.mrb[0].mxu1 %vm405_vm1, %v324_v14 }
  0x17   : > { %1260 = vmatprep.mubr.msk.bf16.mxu1 %vm1329_vm0, %v1328_v0  ;;  %1213 = vmatmul.mubr.msk.bf16.vlgmr.msra.gmra.mrb[0].mxu0 %vm405_vm1, %v324_v14  ;;  %vm975_vm1 = vcmask 1045504  }
  0x18   : > { %739 = vmatprep.mubr.bf16.mxu0 %v1330_v9 }
  0xe9   : > { %v484_v23 = vpop.f32.mrb[0].mxu1 }
  0xea   : > { %v493_v24 = vpack.c.bf16 %v484_v23, %v484_v23  ;;  %v1248_v26 = vpop.f32.mrb[1].mxu1  ;;  %v443_v30 = vpop.f32.mrb[0].mxu0 }
  0xeb   : > { %v487_v27 = vpop.f32.mrb[2].mxu1  ;;  %v445_v31 = vpop.f32.mrb[1].mxu0  ;;  %v491_v35 = vpack.c.bf16 %v443_v30, %v443_v30 }
  0xec   : > { %v516_v28 = vrot.slane %v493_v24, 6  ;;  %v1249_v29 = vpop.f32.mrb[3].mxu1  ;;  %v447_v33 = vpop.f32.mrb[2].mxu0  ;;  %v492_v39 = vpack.c.bf16 %v445_v31, %v445_v31 }
  0xed   : > { %v448_v34 = vpop.f32.mrb[3].mxu0  ;;  %v514_v36 = vrot.slane %v491_v35, 6 }
  0xee   : > { %v526_v32 = vsel %vm517_vm2, %v509_v25, %v516_v28  ;;  %v515_v41 = vrot.slane %v492_v39, 6 }
  0xef   : > { %547 = vrot.lane.b32.xlu1 %v526_v32, %s1332_s19  ;;  %534 = vrot.lane.b32.xlu0 %v526_v32, %s1333_s20  ;;  %v1463_v38 = vsel %vm517_vm2, %v502_v37, %v514_v36 }
  0xf0   : > { %v523_v42 = vsel %vm517_vm2, %v510_v40, %v515_v41 }
  0xf3   : > { %573 = vrot.lane.b32.xlu1 %v526_v32, %s1334_s21  ;;  %560 = vrot.lane.b32.xlu0 %v526_v32, %s1335_s22 }
  0xf7   : > { %599 = vrot.lane.b32.xlu1 %v526_v32, %s1336_s23  ;;  %586 = vrot.lane.b32.xlu0 %v526_v32, %s1337_s24 }
  0xfb   : > { %612 = vrot.lane.b32.xlu0 %v526_v32, %s1338_s25  ;;  %530 = vrot.lane.b32.xlu1 %v1463_v38, %s1333_s20 }
  0xff   : > { %543 = vrot.lane.b32.xlu0 %v1463_v38, %s1332_s19  ;;  %556 = vrot.lane.b32.xlu1 %v1463_v38, %s1335_s22 }
 0x103   : > { %569 = vrot.lane.b32.xlu0 %v1463_v38, %s1334_s21  ;;  %582 = vrot.lane.b32.xlu1 %v1463_v38, %s1337_s24 }
 0x107   : > { %608 = vrot.lane.b32.xlu1 %v1463_v38, %s1338_s25  ;;  %532 = vrot.lane.b32.xlu0 %v523_v42, %s1333_s20 }
 0x10b   : > { %558 = vrot.lane.b32.xlu1 %v523_v42, %s1335_s22  ;;  %545 = vrot.lane.b32.xlu0 %v523_v42, %s1332_s19 }
 0x10f   : > { %584 = vrot.lane.b32.xlu1 %v523_v42, %s1337_s24  ;;  %571 = vrot.lane.b32.xlu0 %v523_v42, %s1334_s21 }
 0x113   : > { %610 = vrot.lane.b32.xlu1 %v523_v42, %s1338_s25  ;;  %597 = vrot.lane.b32.xlu0 %v523_v42, %s1336_s23 }
 0x117   : > { %621 = vrot.lane.b32.xlu1 %v1463_v38, %s1339_s26  ;;  %595 = vrot.lane.b32.xlu0 %v1463_v38, %s1336_s23 }
 0x11b   : > { %625 = vrot.lane.b32.xlu1 %v526_v32, %s1339_s26  ;;  %623 = vrot.lane.b32.xlu0 %v523_v42, %s1339_s26 }
 0x11f   : > { %790 = vperm.xlu0 %1297, %v693_v43  }
 0x161   : > { %v548_v44 = vpop.permute.xlu1 %547  ;;  %v535_v45 = vpop.permute.xlu0 %534 }
 0x165   : > { %v1495_v46 = vpop.permute.xlu1 %573  ;;  %v561_v47 = vpop.permute.xlu0 %560 }
 0x169   : > { %v1497_v48 = vpop.permute.xlu1 %599  ;;  %v587_v49 = vpop.permute.xlu0 %586 }
 0x16d   : > { %v1499_v50 = vpop.permute.xlu0 %612  ;;  %v531_v51 = vpop.permute.xlu1 %530 }
 0x16e   : > { %v542_v52 = vsel %vm536_vm3, %v535_v45, %v531_v51 }
 0x16f   : > { %v637_v53 = vrot.slane %v542_v52, 4 }
 0x171   : > { %v544_v54 = vpop.permute.xlu0 %543  ;;  %v557_v55 = vpop.permute.xlu1 %556  ;;  %v658_v56 = vsel %vm650_vm4, %v526_v32, %v637_v53 }
 0x172   : > { %v568_v57 = vsel %vm562_vm5, %v561_v47, %v557_v55  ;;  %1251 = vmatpush3.bf16.msra.mxu1 %v658_v56  ;;  %v555_v59 = vsel %vm549_vm6, %v548_v44, %v544_v54 }
 0x173   : > { %v641_v58 = vrot.slane %v568_v57, 4  ;;  %1252 = vmatprep.subr.bf16.mxu1 %v1328_v0  ;;  %v694_v57 = vld [vmem:[%s1656_s4] sm:$0x3] }
 0x175   : > { %v570_v60 = vpop.permute.xlu0 %569  ;;  %v583_v61 = vpop.permute.xlu1 %582  ;;  %v669_v62 = vsel %vm650_vm4, %v555_v59, %v641_v58  ;;  %v809_v59 = vsub.s32 0, %v1452_v19 }
 0x176   : > { %v594_v63 = vsel %vm588_vm7, %v587_v49, %v583_v61  ;;  %1253 = vmatpush3.bf16.msra.mxu1 %v669_v62  ;;  %v581_v2 = vsel %vm575_vm8, %v1495_v46, %v570_v60 }
 0x177   : > { %v645_v1 = vrot.slane %v594_v63, 4  ;;  %1254 = vmatprep.subr.bf16.mxu1 %v1328_v0 }
 0x179   : > { %v609_v3 = vpop.permute.xlu1 %608  ;;  %v533_v4 = vpop.permute.xlu0 %532  ;;  %v680_v5 = vsel %vm650_vm4, %v581_v2, %v645_v1 }
 0x17a   : > { %v537_v6 = vsel %vm536_vm3, %v531_v51, %v533_v4  ;;  %v538_v7 = vsel %vm536_vm3, %v533_v4, %v535_v45  ;;  %1255 = vmatpush3.bf16.msra.mxu1 %v680_v5  ;;  %v620_v36 = vsel %vm614_vm9, %v1499_v50, %v609_v3 }
 0x17b   : > { %v635_v8 = vrot.slane %v537_v6, 4  ;;  %v636_v10 = vrot.slane %v538_v7, 4  ;;  %1256 = vmatprep.subr.bf16.mxu1 %v1328_v0  ;;  %v649_v41 = vrot.slane %v620_v36, 4 }
 0x17d   : > { %v559_v11 = vpop.permute.xlu1 %558  ;;  %v546_v12 = vpop.permute.xlu0 %545  ;;  %v655_v13 = vsel %vm650_vm4, %v523_v42, %v636_v10  ;;  %v652_v14 = vsel %vm650_vm4, %v1463_v38, %v635_v8 }
 0x17e   : > { %v563_v15 = vsel %vm562_vm5, %v557_v55, %v559_v11  ;;  %v564_v16 = vsel %vm562_vm5, %v559_v11, %v561_v47  ;;  %707 = vmatprep.subr.bf16.mxu0 %v655_v13  ;;  %v550_v20 = vsel %vm549_vm6, %v544_v54, %v546_v12  ;;  %v551_v21 = vsel %vm549_vm6, %v546_v12, %v548_v44 }
 0x17f   : > { %v639_v17 = vrot.slane %v563_v15, 4  ;;  %v640_v18 = vrot.slane %v564_v16, 4  ;;  %708 = vmatpush1.bf16.msra.mxu0 %v652_v14  ;;  %v813_v14 = vsub.s32 1, %v1452_v19 }
 0x181   : > { %v585_v22 = vpop.permute.xlu1 %584  ;;  %v572_v23 = vpop.permute.xlu0 %571  ;;  %v666_v24 = vsel %vm650_vm4, %v551_v21, %v640_v18  ;;  %v662_v25 = vsel %vm650_vm4, %v550_v20, %v639_v17 }
 0x182   : > { %v589_v26 = vsel %vm588_vm7, %v583_v61, %v585_v22  ;;  %v590_v27 = vsel %vm588_vm7, %v585_v22, %v587_v49  ;;  %709 = vmatprep.subr.bf16.mxu0 %v666_v24  ;;  %v576_v30 = vsel %vm575_vm8, %v570_v60, %v572_v23  ;;  %v577_v31 = vsel %vm575_vm8, %v572_v23, %v1495_v46  ;;  %v805_v61 = vld [vmem:[%s1655_s3] sm:$0x7] }
 0x183   : > { %v643_v28 = vrot.slane %v589_v26, 4  ;;  %v644_v29 = vrot.slane %v590_v27, 4  ;;  %710 = vmatpush1.bf16.msra.mxu0 %v662_v25  ;;  %v817_v60 = vsub.s32 2, %v1452_v19  ;;  %v810_v7 = vrot.slane %v805_v61, %v809_v59 }
 0x184   : > { %v814_v22 = vrot.slane %v805_v61, %v813_v14 }
 0x185   : > { %v611_v32 = vpop.permute.xlu1 %610  ;;  %v598_v33 = vpop.permute.xlu0 %597  ;;  %v677_v34 = vsel %vm650_vm4, %v577_v31, %v644_v29  ;;  %v673_v35 = vsel %vm650_vm4, %v576_v30, %v643_v28  ;;  %v818_v8 = vrot.slane %v805_v61, %v817_v60 }
 0x186   : > { %v615_v37 = vsel %vm614_vm9, %v609_v3, %v611_v32  ;;  %v616_v38 = vsel %vm614_vm9, %v611_v32, %v1499_v50  ;;  %711 = vmatprep.subr.bf16.mxu0 %v677_v34  ;;  %v603_v40 = vsel %vm601_vm10, %v598_v33, %v1497_v48  ;;  %v1008_v34 = vld [vmem:[%s1659_s7] sm:$0xf] }
 0x187   : > { %v648_v39 = vrot.slane %v616_v38, 4  ;;  %712 = vmatpush1.bf16.msra.mxu0 %v673_v35  ;;  %v647_v42 = vrot.slane %v615_v37, 4 }
 0x189   : > { %v622_v43 = vpop.permute.xlu1 %621  ;;  %v596_v44 = vpop.permute.xlu0 %595  ;;  %v688_v45 = vsel %vm650_vm4, %v603_v40, %v648_v39 }
 0x18a   : > { %v602_v46 = vsel %vm601_vm10, %v596_v44, %v598_v33  ;;  %v607_v47 = vsel %vm601_vm10, %v1497_v48, %v596_v44  ;;  %713 = vmatprep.subr.bf16.mxu0 %v688_v45 }
 0x18b   : > { %v684_v49 = vsel %vm650_vm4, %v602_v46, %v647_v42  ;;  %v691_v50 = vsel %vm650_vm4, %v607_v47, %v649_v41 }
 0x18c   : > { %714 = vmatpush1.bf16.msra.mxu0 %v684_v49  ;;  %1257 = vmatpush3.bf16.msra.mxu1 %v691_v50 }
 0x18d   : > { %v626_v51 = vpop.permute.xlu1 %625  ;;  %v624_v52 = vpop.permute.xlu0 %623  ;;  %1258 = vmatprep.subr.bf16.mxu1 %v1328_v0 }
 0x18e   : > { %v633_v53 = vsel %vm627_vm11, %v626_v51, %v622_v43  ;;  %v628_v54 = vsel %vm627_vm11, %v622_v43, %v624_v52  ;;  %v629_v55 = vsel %vm627_vm11, %v624_v52, %v626_v51 }
 0x18f   : > { %v705_v48 = vsel %vm650_vm4, %v633_v53, 0  ;;  %v700_v56 = vsel %vm650_vm4, %v628_v54, 0  ;;  %1215 = vmatprep.subr.msk.bf16.mxu0 %vm650_vm4, %v629_v55 }
 0x190   : > { %716 = vmatpush1.bf16.msra.mxu0 %v700_v56  ;;  %1259 = vmatpush3.bf16.msra.mxu1 %v705_v48 }
 0x191   : > { %1264 = vmatprep.subr.bf16.mxu1 %v1328_v0 }
 0x193   : > { %1216 = vmatmul.mubr.msk.bf16.vlgmr.msra.gmra.mrb[4].mxu0 %vm695_vm12, %v694_v57  ;;  %1261 = vmatmul.mubr.msk.bf16.vlgmr.msra.gmra.mrb[4].mxu1 %vm695_vm12, %v694_v57 }
 0x194   : > { %1054 = vmatprep.mubr.bf16.mxu0 %v1330_v9  ;;  %1270 = vmatprep.mubr.msk.bf16.mxu1 %vm1329_vm0, %v1328_v0  ;;  %vm835_vm0 = vcmask 154624  }
 0x19e   : > { %v791_v58 = vpop.permute.xlu0 %790 }
 0x266   : > { %v782_v62 = vpop.f32.mrb[4].mxu1  ;;  %v741_v63 = vpop.f32.mrb[4].mxu0 }
 0x267   : > { %v795_v1 = vadd.f32 %v791_v58, %v782_v62  ;;  %v793_v2 = vadd.f32 %v791_v58, %v741_v63  ;;  %v743_v3 = vpop.f32.mrb[5].mxu0  ;;  %v1262_v4 = vpop.f32.mrb[5].mxu1 }
 0x268   : > { %v794_v5 = vadd.f32 %v791_v58, %v743_v3  ;;  %v745_v9 = vpop.f32.mrb[6].mxu0  ;;  %v785_v6 = vpop.f32.mrb[6].mxu1 }
 0x269   : > { %vm798_vm13 = vcmp.ge.f32.partialorder %v795_v1, 0.0  ;;  %v801_v10 = vmul.f32 0.01, %v795_v1  ;;  %vm796_vm14 = vcmp.ge.f32.partialorder %v793_v2, 0.0  ;;  %v799_v11 = vmul.f32 0.01, %v793_v2 }
 0x26a   : > { %v746_v12 = vpop.f32.mrb[7].mxu0  ;;  %v1263_v13 = vpop.f32.mrb[7].mxu1  ;;  %v800_v16 = vmul.f32 0.01, %v794_v5  ;;  %vm797_vm15 = vcmp.ge.f32.partialorder %v794_v5, 0.0 }
 0x26b   : > { %v802_v15 = vsel %vm796_vm14, %v793_v2, %v799_v11  ;;  %v804_v17 = vsel %vm798_vm13, %v795_v1, %v801_v10 }
 0x26c   : > { %v822_v18 = vmul.f32 %v810_v7, %v802_v15  ;;  %v824_v20 = vmul.f32 %v818_v8, %v804_v17  ;;  %v803_v23 = vsel %vm797_vm15, %v794_v5, %v800_v16 }
 0x26d   : > { %v823_v24 = vmul.f32 %v814_v22, %v803_v23 }
 0x26e   : > { %v1298_v21 = vpack.i.bf16 %v822_v18, %v824_v20 }
 0x270   : > { %1299 = vrot.lane.b32.xlu1 %v1298_v21, %s1340_s13 }
 0x274   : > { %833 = vrot.lane.b32.xlu1 %v823_v24, %s1340_s13 }
 0x2e2   : > { %v1300_v25 = vpop.permute.xlu1 %1299 }
 0x2e3   : > { %v1302_v26 = vunpack.i.h.bf16 %v1300_v25  ;;  %v1301_v27 = vunpack.i.l.bf16 %v1300_v25 }
 0x2e5   : > { %v841_v28 = vsel %vm835_vm0, %v1301_v27, %v1302_v26 }
 0x2e6   : > { %v842_v29 = vpack.c.bf16 %v841_v28, %v841_v28  ;;  %v834_v19 = vpop.permute.xlu1 %833 }
 0x2e7   : > { %v836_v30 = vsel %vm835_vm0, %v1302_v26, %v834_v19  ;;  %v837_v31 = vsel %vm835_vm0, %v834_v19, %v1301_v27 }
 0x2e8   : > { %848 = vrot.lane.b32.xlu0 %v842_v29, %s1333_s20  ;;  %859 = vrot.lane.b32.xlu1 %v842_v29, %s1332_s19  ;;  %v843_v32 = vpack.c.bf16 %v836_v30, %v836_v30  ;;  %v844_v33 = vpack.c.bf16 %v837_v31, %v837_v31 }
 0x2ec   : > { %870 = vrot.lane.b32.xlu0 %v842_v29, %s1335_s22  ;;  %892 = vrot.lane.b32.xlu1 %v842_v29, %s1337_s24 }
 0x2f0   : > { %903 = vrot.lane.b32.xlu0 %v842_v29, %s1336_s23  ;;  %881 = vrot.lane.b32.xlu1 %v842_v29, %s1334_s21 }
 0x2f4   : > { %852 = vrot.lane.b32.xlu1 %v844_v33, %s1333_s20  ;;  %850 = vrot.lane.b32.xlu0 %v843_v32, %s1333_s20 }
 0x2f8   : > { %861 = vrot.lane.b32.xlu1 %v843_v32, %s1332_s19  ;;  %863 = vrot.lane.b32.xlu0 %v844_v33, %s1332_s19 }
 0x2fc   : > { %874 = vrot.lane.b32.xlu1 %v844_v33, %s1335_s22  ;;  %872 = vrot.lane.b32.xlu0 %v843_v32, %s1335_s22 }
 0x300   : > { %894 = vrot.lane.b32.xlu1 %v843_v32, %s1337_s24  ;;  %896 = vrot.lane.b32.xlu0 %v844_v33, %s1337_s24 }
 0x304   : > { %907 = vrot.lane.b32.xlu1 %v844_v33, %s1336_s23  ;;  %905 = vrot.lane.b32.xlu0 %v843_v32, %s1336_s23 }
 0x308   : > { %885 = vrot.lane.b32.xlu1 %v844_v33, %s1334_s21  ;;  %883 = vrot.lane.b32.xlu0 %v843_v32, %s1334_s21  ;;  %s322_s21 = scalar_lea.vmem %s1660_s8, %s1275_s18 }
 0x30c   : > { %916 = vrot.lane.b32.xlu1 %v843_v32, %s1338_s25  ;;  %918 = vrot.lane.b32.xlu0 %v844_v33, %s1338_s25 }
 0x310   : > { %925 = vrot.lane.b32.xlu1 %v842_v29, %s1339_s26  ;;  %914 = vrot.lane.b32.xlu0 %v842_v29, %s1338_s25 }
 0x314   : > { %929 = vrot.lane.b32.xlu1 %v844_v33, %s1339_s26  ;;  %927 = vrot.lane.b32.xlu0 %v843_v32, %s1339_s26 }
 0x318   : > { %1105 = vperm.xlu0 %1297, %v1008_v34  }
 0x35a   : > { %v849_v35 = vpop.permute.xlu0 %848  ;;  %v860_v36 = vpop.permute.xlu1 %859 }
 0x35e   : > { %v871_v37 = vpop.permute.xlu0 %870  ;;  %v893_v38 = vpop.permute.xlu1 %892 }
 0x362   : > { %v1591_v39 = vpop.permute.xlu0 %903  ;;  %v882_v40 = vpop.permute.xlu1 %881 }
 0x366   : > { %v851_v41 = vpop.permute.xlu0 %850  ;;  %v853_v42 = vpop.permute.xlu1 %852 }
 0x367   : > { %v854_v43 = vsel %vm536_vm3, %v849_v35, %v851_v41  ;;  %v858_v44 = vsel %vm536_vm3, %v853_v42, %v849_v35  ;;  %v855_v45 = vsel %vm536_vm3, %v851_v41, %v853_v42  ;;  %vm1010_vm3 = vcmask 293888  }
 0x368   : > { %v937_v46 = vrot.slane %v854_v43, 6  ;;  %v939_v50 = vrot.slane %v858_v44, 6  ;;  %v938_v54 = vrot.slane %v855_v45, 6 }
 0x36a   : > { %v864_v47 = vpop.permute.xlu0 %863  ;;  %v862_v49 = vpop.permute.xlu1 %861  ;;  %v962_v57 = vsel %vm517_vm2, %v842_v29, %v937_v46  ;;  %v968_v60 = vsel %vm517_vm2, %v844_v33, %v939_v50  ;;  %v965_v4 = vsel %vm517_vm2, %v843_v32, %v938_v54 }
 0x36b   : > { %v869_v51 = vsel %vm549_vm6, %v864_v47, %v860_v36  ;;  %v865_v52 = vsel %vm549_vm6, %v860_v36, %v862_v49  ;;  %v866_v53 = vsel %vm549_vm6, %v862_v49, %v864_v47 }
 0x36c   : > { %v943_v55 = vrot.slane %v869_v51, 4  ;;  %v941_v48 = vrot.slane %v865_v52, 4  ;;  %v942_v56 = vrot.slane %v866_v53, 4 }
 0x36e   : > { %v873_v58 = vpop.permute.xlu0 %872  ;;  %v875_v59 = vpop.permute.xlu1 %874  ;;  %v972_v5 = vsel %vm650_vm4, %v965_v4, %v942_v56  ;;  %v974_v9 = vsel %vm650_vm4, %v968_v60, %v943_v55  ;;  %v970_v6 = vsel %vm650_vm4, %v962_v57, %v941_v48 }
 0x36f   : > { %v876_v61 = vsel %vm562_vm5, %v871_v37, %v873_v58  ;;  %v877_v62 = vsel %vm562_vm5, %v873_v58, %v875_v59  ;;  %v880_v63 = vsel %vm562_vm5, %v875_v59, %v871_v37  ;;  %v1009_v58 = vld [vmem:[%s1658_s6] sm:$0x3] }
 0x370   : > { %v945_v1 = vrot.slane %v876_v61, 2  ;;  %v946_v2 = vrot.slane %v877_v62, 2  ;;  %v947_v3 = vrot.slane %v880_v63, 2 }
 0x372   : > { %v897_v7 = vpop.permute.xlu0 %896  ;;  %v895_v8 = vpop.permute.xlu1 %894  ;;  %v980_v10 = vsel %vm975_vm1, %v972_v5, %v946_v2  ;;  %v983_v11 = vsel %vm975_vm1, %v974_v9, %v947_v3  ;;  %v977_v12 = vsel %vm975_vm1, %v970_v6, %v945_v1 }
 0x373   : > { %1022 = vmatprep.subr.bf16.mxu0 %v980_v10  ;;  %1265 = vmatpush3.bf16.msra.mxu1 %v983_v11  ;;  %v899_v15 = vsel %vm588_vm7, %v895_v8, %v897_v7  ;;  %v902_v18 = vsel %vm588_vm7, %v897_v7, %v893_v38  ;;  %v898_v23 = vsel %vm588_vm7, %v893_v38, %v895_v8 }
 0x374   : > { %1023 = vmatpush1.bf16.msra.mxu0 %v977_v12  ;;  %1266 = vmatprep.subr.bf16.mxu1 %v1328_v0  ;;  %v950_v21 = vrot.slane %v899_v15, 6  ;;  %v951_v24 = vrot.slane %v902_v18, 6  ;;  %v949_v31 = vrot.slane %v898_v23, 6 }
 0x376   : > { %v906_v13 = vpop.permute.xlu0 %905  ;;  %v908_v14 = vpop.permute.xlu1 %907 }
 0x377   : > { %v910_v22 = vsel %vm601_vm10, %v906_v13, %v908_v14  ;;  %v909_v32 = vsel %vm601_vm10, %v1591_v39, %v906_v13  ;;  %v913_v33 = vsel %vm601_vm10, %v908_v14, %v1591_v39 }
 0x378   : > { %v954_v28 = vrot.slane %v910_v22, 4  ;;  %v953_v42 = vrot.slane %v909_v32, 4  ;;  %v955_v43 = vrot.slane %v913_v33, 4 }
 0x37a   : > { %v884_v16 = vpop.permute.xlu0 %883  ;;  %v886_v17 = vpop.permute.xlu1 %885 }
 0x37b   : > { %v888_v20 = vsel %vm575_vm8, %v884_v16, %v886_v17  ;;  %v887_v29 = vsel %vm575_vm8, %v882_v40, %v884_v16  ;;  %v891_v19 = vsel %vm575_vm8, %v886_v17, %v882_v40 }
 0x37c   : > { %v990_v25 = vsel %vm517_vm2, %v888_v20, %v950_v21  ;;  %v987_v36 = vsel %vm517_vm2, %v887_v29, %v949_v31  ;;  %v992_v37 = vsel %vm517_vm2, %v891_v19, %v951_v24 }
 0x37d   : > { %v996_v35 = vsel %vm650_vm4, %v990_v25, %v954_v28  ;;  %v994_v47 = vsel %vm650_vm4, %v987_v36, %v953_v42  ;;  %v998_v49 = vsel %vm650_vm4, %v992_v37, %v955_v43 }
 0x37e   : > { %v919_v26 = vpop.permute.xlu0 %918  ;;  %v917_v27 = vpop.permute.xlu1 %916 }
 0x37f   : > { %v921_v30 = vsel %vm614_vm9, %v917_v27, %v919_v26 }
 0x380   : > { %v958_v34 = vrot.slane %v921_v30, 2 }
 0x382   : > { %v915_v38 = vpop.permute.xlu0 %914  ;;  %v926_v41 = vpop.permute.xlu1 %925  ;;  %v1003_v40 = vsel %vm975_vm1, %v996_v35, %v958_v34 }
 0x383   : > { %v920_v44 = vsel %vm614_vm9, %v915_v38, %v917_v27  ;;  %v924_v45 = vsel %vm614_vm9, %v919_v26, %v915_v38  ;;  %1024 = vmatprep.subr.bf16.mxu0 %v1003_v40 }
 0x384   : > { %v957_v46 = vrot.slane %v920_v44, 2  ;;  %v959_v39 = vrot.slane %v924_v45, 2 }
 0x386   : > { %v928_v50 = vpop.permute.xlu0 %927  ;;  %v930_v51 = vpop.permute.xlu1 %929  ;;  %v1000_v52 = vsel %vm975_vm1, %v994_v47, %v957_v46  ;;  %v1006_v53 = vsel %vm975_vm1, %v998_v49, %v959_v39 }
 0x387   : > { %v931_v54 = vsel %vm627_vm11, %v926_v41, %v928_v50  ;;  %v932_v55 = vsel %vm627_vm11, %v928_v50, %v930_v51  ;;  %v935_v48 = vsel %vm627_vm11, %v930_v51, %v926_v41  ;;  %1025 = vmatpush1.bf16.msra.mxu0 %v1000_v52  ;;  %1267 = vmatpush3.bf16.msra.mxu1 %v1006_v53 }
 0x388   : > { %1218 = vmatprep.subr.msk.bf16.mxu0 %vm517_vm2, %v932_v55  ;;  %1268 = vmatprep.subr.bf16.mxu1 %v1328_v0  ;;  %v1015_v56 = vsel %vm517_vm2, %v931_v54, 0  ;;  %v1020_v57 = vsel %vm517_vm2, %v935_v48, 0 }
 0x38b   : > { %1027 = vmatpush1.bf16.msra.mxu0 %v1015_v56  ;;  %1269 = vmatpush3.bf16.msra.mxu1 %v1020_v57 }
 0x38e   : > { %1219 = vmatmul.mubr.msk.bf16.vlgmr.msra.gmra.mrb[8].mxu0 %vm1010_vm3, %v1009_v58  ;;  %1271 = vmatmul.mubr.msk.bf16.vlgmr.msra.gmra.mrb[8].mxu1 %vm1010_vm3, %v1009_v58 }
 0x397   : > { %v1106_v59 = vpop.permute.xlu0 %1105 }
 0x461   : > { %v1056_v60 = vpop.f32.mrb[8].mxu0  ;;  %v1097_v61 = vpop.f32.mrb[8].mxu1 }
 0x462   : > { %v1108_v62 = vadd.f32 %v1106_v59, %v1056_v60  ;;  %v1110_v63 = vadd.f32 %v1106_v59, %v1097_v61  ;;  %v1058_v0 = vpop.f32.mrb[9].mxu0  ;;  %v1272_v1 = vpop.f32.mrb[9].mxu1 }
 0x463   : > { %v1109_v2 = vadd.f32 %v1106_v59, %v1058_v0  ;;  %v1060_v3 = vpop.f32.mrb[10].mxu0  ;;  %v1100_v4 = vpop.f32.mrb[10].mxu1 }
 0x464   : > { %vm1111_vm2 = vcmp.ge.f32.partialorder %v1108_v62, 0.0  ;;  %v1114_v5 = vmul.f32 0.01, %v1108_v62  ;;  %vm1113_vm4 = vcmp.ge.f32.partialorder %v1110_v63, 0.0  ;;  %v1116_v9 = vmul.f32 0.01, %v1110_v63 }
 0x465   : > { %vm1112_vm5 = vcmp.ge.f32.partialorder %v1109_v2, 0.0  ;;  %v1115_v6 = vmul.f32 0.01, %v1109_v2  ;;  %v1061_v7 = vpop.f32.mrb[11].mxu0  ;;  %v1273_v8 = vpop.f32.mrb[11].mxu1 }
 0x466   : > { %v1117_v10 = vsel %vm1111_vm2, %v1108_v62, %v1114_v5  ;;  %v1119_v11 = vsel %vm1113_vm4, %v1110_v63, %v1116_v9 }
 0x467   : > { %1125 = vst [vmem:[%s322_s21 + $0x8] sm:$0xf] %v1119_v11  ;;  %v1118_v12 = vsel %vm1112_vm5, %v1109_v2, %v1115_v6 }
 0x468   : > { %v1122_v13 = vcombine.low %v1117_v10, %v1118_v12 }
 0x46a   : > { %1124 = vst [vmem:[%s322_s21] sm:$0xff] %v1122_v13 }
 0x46b PF: > { %s18_s27 = sadd.s32 1, %s1326_s27  }
 0x46c   : > { %p15_p4 = scmp.ge.s32.totalorder %s18_s27, 4  }
 0x46e   :  { %17 = sbr.rel (!%p15_p4) target bundleno = 1 (0x1), region = 85 }

</bundles_post_ra>
